<compile_context>
chip_gen: v7x
topology: tpu7x:2x2x1
jax: 0.10.0
libtpu: 0.0.40
codegen_flags: <defaults>
</compile_context>

<pallas_src>
import functools

import jax
import jax.numpy as jnp
from jax.experimental import pallas as pl
from jax.experimental.pallas import tpu as pltpu

LANES = 128          # lane-dense last dim of the flattened slab
ACC_ROWS = 256       # fixed accumulator rows (256 x 128 x 4B = 128 KiB)
_TM_MAX_DEFAULT = 8192   # v6e / v7x row tile (4 MiB per f32 operand per step)
_TM_MAX_V5 = 4096        # v5e row tile


def _default_tm_max() -> int:
    try:
        kind = jax.devices()[0].device_kind.lower()
    except Exception:  # pragma: no cover - defensive; default is safe anywhere
        return _TM_MAX_DEFAULT
    return _TM_MAX_V5 if "v5" in kind else _TM_MAX_DEFAULT


def _loss_terms(x, y):
    """Numerically stable BCE-with-logits terms, computed in f32."""
    x = x.astype(jnp.float32)
    y = y.astype(jnp.float32)
    return jnp.maximum(x, 0.0) - x * y + jnp.log1p(jnp.exp(-jnp.abs(x)))


def _bce_kernel(x_ref, y_ref, out_ref, acc_ref, *,
                tm, acc_rows, rows, steps_per_core, full_blocks):
    i = pl.program_id(1)

    @pl.when(i == 0)
    def _():
        acc_ref[...] = jnp.zeros_like(acc_ref)

    # True (unclamped) global row-block index; the in_spec clamps the DMA so
    # an extra step on the second core re-reads valid memory.
    b = pl.program_id(0) * steps_per_core + i

    def loss_of(x, y):
        # keep the log1p(exp(-|x|)) form: 2 EUP ops + a few VALU ops per elem
        return jnp.maximum(x, 0.0) - x * y + jnp.log1p(jnp.exp(-jnp.abs(x)))

    def accumulate(loss):
        if tm == acc_rows:
            acc_ref[...] += loss
        else:
            # leading-axis reshape is tile-aligned (free); the sum is plain
            # vreg VALU adds into the small fixed accumulator (no XLU).
            acc_ref[...] += loss.reshape(tm // acc_rows, acc_rows, LANES).sum(axis=0)

    # Hot path: fully-valid blocks -> pure elementwise accumulate, no mask.
    @pl.when(b < full_blocks)
    def _():
        accumulate(loss_of(x_ref[...].astype(jnp.float32),
                           y_ref[...].astype(jnp.float32)))

    # Cold path: ragged last block and (when the block count is odd) the
    # fully-masked duplicate block on the second core.  Mask relative to the
    # block (no global element index -> no int32 overflow) and zero the
    # inputs BEFORE the loss so no NaN/Inf is computed from stale VMEM.
    @pl.when(b >= full_blocks)
    def _():
        valid = jnp.maximum(rows - b * tm, 0)                    # scalar int32
        row = jax.lax.broadcasted_iota(jnp.int32, (tm, LANES), 0)
        keep = row < valid
        x = jnp.where(keep, x_ref[...].astype(jnp.float32), 0.0)
        y = jnp.where(keep, y_ref[...].astype(jnp.float32), 0.0)
        accumulate(jnp.where(keep, loss_of(x, y), 0.0))

    # Epilogue: single cross-lane/sublane reduction per core.
    @pl.when(i == pl.num_programs(1) - 1)
    def _():
        out_ref[0, 0] = jnp.sum(acc_ref[...])


def bce_loss_logits(logits: jax.Array, targets: jax.Array, *,
                    min_pallas_elements: int = 1 << 16,
                    tm_max: int | None = None) -> jax.Array:
    """Mean binary cross-entropy with logits over all elements."""
    assert logits.shape == targets.shape
    count = logits.size
    if count == 0:
        return jnp.float32(jnp.nan)

    # Tiny inputs: pallas_call fixed cost (+ ~0.35us/step) dominates -> XLA.
    if count < max(min_pallas_elements, LANES):
        return jnp.mean(_loss_terms(logits, targets))

    x_flat = logits.reshape(-1)     # reshape of contiguous data: free
    y_flat = targets.reshape(-1)

    rem = count % LANES
    aligned = count - rem
    if rem:
        # <=127-element ragged lane tail: tiny jnp slice, summed in f32.
        tail_sum = jnp.sum(_loss_terms(x_flat[aligned:], y_flat[aligned:]))
        # TODO(synk): this prefix slice still materializes a copy of both
        # operands for ragged sizes; CompilerParams(allow_input_fusion=...)
        # could fuse it away.  The common NN case (count % 128 == 0) takes the
        # zero-copy path.
        x_flat = x_flat[:aligned]
        y_flat = y_flat[:aligned]
    else:
        tail_sum = jnp.float32(0.0)

    m = aligned // LANES
    x2 = x_flat.reshape(m, LANES)
    y2 = y_flat.reshape(m, LANES)

    tmax = tm_max if tm_max is not None else _default_tm_max()
    if m <= tmax:
        tm = m                       # single block == full dim (always legal)
        total_blocks = 1
    else:
        tm = tmax                    # multiple of 8, multiple of ACC_ROWS
        total_blocks = pl.cdiv(m, tm)
    full_blocks = m // tm            # blocks with all tm rows valid

    num_cores = 2 if total_blocks >= 2 else 1
    steps_per_core = pl.cdiv(total_blocks, num_cores)
    last_block = total_blocks - 1

    acc_rows = ACC_ROWS if (tm % ACC_ROWS == 0) else tm

    kernel = functools.partial(
        _bce_kernel, tm=tm, acc_rows=acc_rows, rows=m,
        steps_per_core=steps_per_core, full_blocks=full_blocks)

    def in_map(c, i):
        # Clamp so a trailing (odd-block-count) step on the second core
        # re-reads the last real block instead of DMA-ing out of bounds; its
        # contribution is fully masked in the kernel.
        return (jnp.minimum(c * steps_per_core + i, last_block), 0)

    in_spec = pl.BlockSpec((tm, LANES), in_map)

    # VMEM budget: 2 inputs x 2 pipeline buffers (native dtype) + fixed
    # accumulator + headroom for compiler temporaries of the loss expression.
    in_bytes = 2 * tm * LANES * (x2.dtype.itemsize + y2.dtype.itemsize)
    vmem_limit = int(in_bytes + acc_rows * LANES * 4
                     + 2 * tm * LANES * 4 + (2 << 20))

    partials = pl.pallas_call(
        kernel,
        out_shape=jax.ShapeDtypeStruct((num_cores, 1), jnp.float32),
        grid_spec=pltpu.PrefetchScalarGridSpec(
            num_scalar_prefetch=0,
            grid=(num_cores, steps_per_core),
            in_specs=[in_spec, in_spec],
            out_specs=pl.BlockSpec(
                (1, 1), lambda c, i: (c, 0), memory_space=pltpu.SMEM),
            scratch_shapes=[pltpu.VMEM((acc_rows, LANES), jnp.float32)],
        ),
        compiler_params=pltpu.CompilerParams(
            dimension_semantics=("parallel", "arbitrary"),
            vmem_limit_bytes=vmem_limit,
        ),
    )(x2, y2)

    total = jnp.sum(partials) + tail_sum
    # NOTE: f32 division; for counts >= 2^24 the count is rounded in f32 —
    # acceptable for a scalar loss.
    return total / count


if __name__ == "__main__":
    key = jax.random.PRNGKey(0)

    def ref(x, y):
        return jnp.mean(_loss_terms(x, y))

    checks = [
        # (shape, wrapper kwargs) — all small; kwargs force the kernel paths.
        ((2, 4, 16, 16), dict(min_pallas_elements=0)),                # single block
        ((3, 5, 37, 41), dict(min_pallas_elements=0, tm_max=64)),     # ragged tail + partial + duplicate block, 2-core grid
        ((2, 4, 128, 128), dict(min_pallas_elements=0, tm_max=512)),  # multi-block + fixed 256-row accumulator
    ]
    for shape, kw in checks:
        k1, k2, key = jax.random.split(key, 3)
        logits = jax.random.normal(k1, shape, dtype=jnp.float32)
        targets = (jax.random.uniform(k2, shape) > 0.5).astype(jnp.float32)

        out = bce_loss_logits(logits, targets, **kw)
        jax.block_until_ready(out)

        expect = ref(logits, targets)
        assert jnp.allclose(out, expect, atol=1e-5, rtol=1e-5), (shape, out, expect)

    print("KERNEL_OK")
</pallas_src>

<mosaic_0001>
module attributes {stable_mosaic.version = 11 : i64} {
  func.func @_bce_kernel(%arg0: i32, %arg1: i32, %arg2: memref<16x128xf32, #tpu.memory_space<vmem>>, %arg3: memref<16x128xf32, #tpu.memory_space<vmem>>, %arg4: memref<1x1xf32, #tpu.memory_space<smem>>, %arg5: memref<16x128xf32, #tpu.memory_space<vmem>>) attributes {dimension_semantics = [#tpu.dimension_semantics<parallel>, #tpu.dimension_semantics<arbitrary>], iteration_bounds = array<i64: 1, 1>, scalar_prefetch = 0 : i64, scratch_operands = 1 : i64, tpu.core_type = #tpu.core_type<tc>, window_params = [{transform_indices = @transform_0, window_bounds = array<i64: 16, 128>}, {transform_indices = @transform_1, window_bounds = array<i64: 16, 128>}, {transform_indices = @transform_2, window_bounds = array<i64: 1, 1>}]} {
    %c0_i32 = arith.constant 0 : i32
    %0 = arith.cmpi eq, %arg1, %c0_i32 : i32
    %1 = arith.extui %0 : i1 to i32
    %c0_i32_0 = arith.constant 0 : i32
    %2 = arith.cmpi ne, %1, %c0_i32_0 : i32
    scf.if %2 {
      %cst = arith.constant 0.000000e+00 : f32
      %14 = vector.broadcast %cst : f32 to vector<16x128xf32>
      %c0 = arith.constant 0 : index
      %c0_7 = arith.constant 0 : index
      %15 = vector.load %arg5[%c0, %c0_7] : memref<16x128xf32, #tpu.memory_space<vmem>>, vector<16x128xf32>
      tpu.vector_store %arg5[%c0, %c0_7], %14 {strides = array<i32>} : memref<16x128xf32, #tpu.memory_space<vmem>>, vector<16x128xf32>,
    } else {
    }
    %c1_i32 = arith.constant 1 : i32
    %3 = arith.muli %arg0, %c1_i32 : i32
    %4 = arith.addi %3, %arg1 : i32
    %c1_i32_1 = arith.constant 1 : i32
    %5 = arith.cmpi slt, %4, %c1_i32_1 : i32
    %6 = arith.extui %5 : i1 to i32
    %c0_i32_2 = arith.constant 0 : i32
    %7 = arith.cmpi ne, %6, %c0_i32_2 : i32
    scf.if %7 {
      %c0 = arith.constant 0 : index
      %c0_7 = arith.constant 0 : index
      %14 = vector.load %arg2[%c0, %c0_7] : memref<16x128xf32, #tpu.memory_space<vmem>>, vector<16x128xf32>
      %c0_8 = arith.constant 0 : index
      %c0_9 = arith.constant 0 : index
      %15 = vector.load %arg3[%c0_8, %c0_9] : memref<16x128xf32, #tpu.memory_space<vmem>>, vector<16x128xf32>
      %cst = arith.constant 0.000000e+00 : f32
      %16 = vector.broadcast %cst : f32 to vector<16x128xf32>
      %17 = arith.maximumf %14, %16 : vector<16x128xf32>
      %18 = arith.mulf %14, %15 : vector<16x128xf32>
      %19 = arith.subf %17, %18 : vector<16x128xf32>
      %20 = math.absf %14 : vector<16x128xf32>
      %cst_10 = arith.constant 0.000000e+00 : f32
      %21 = vector.broadcast %cst_10 : f32 to vector<16x128xf32>
      %22 = arith.subf %21, %20 : vector<16x128xf32>
      %23 = math.exp %22 : vector<16x128xf32>
      %24 = math.log1p %23 : vector<16x128xf32>
      %25 = arith.addf %19, %24 : vector<16x128xf32>
      %c0_11 = arith.constant 0 : index
      %c0_12 = arith.constant 0 : index
      %26 = vector.load %arg5[%c0_11, %c0_12] : memref<16x128xf32, #tpu.memory_space<vmem>>, vector<16x128xf32>
      %27 = arith.addf %26, %25 : vector<16x128xf32>
      %c0_13 = arith.constant 0 : index
      %c0_14 = arith.constant 0 : index
      %28 = vector.load %arg5[%c0_13, %c0_14] : memref<16x128xf32, #tpu.memory_space<vmem>>, vector<16x128xf32>
      tpu.vector_store %arg5[%c0_13, %c0_14], %27 {strides = array<i32>} : memref<16x128xf32, #tpu.memory_space<vmem>>, vector<16x128xf32>,
    } else {
    }
    %c1_i32_3 = arith.constant 1 : i32
    %8 = arith.cmpi sge, %4, %c1_i32_3 : i32
    %9 = arith.extui %8 : i1 to i32
    %c0_i32_4 = arith.constant 0 : i32
    %10 = arith.cmpi ne, %9, %c0_i32_4 : i32
    scf.if %10 {
      %c16_i32 = arith.constant 16 : i32
      %14 = arith.muli %4, %c16_i32 : i32
      %c16_i32_7 = arith.constant 16 : i32
      %15 = arith.subi %c16_i32_7, %14 : i32
      %c0_i32_8 = arith.constant 0 : i32
      %16 = arith.maxsi %15, %c0_i32_8 : i32
      %17 = tpu.iota {dimensions = array<i32: 0>} : vector<16x128xi32>
      %18 = vector.broadcast %16 : i32 to vector<16x128xi32>
      %19 = arith.cmpi slt, %17, %18 : vector<16x128xi32>
      %c0 = arith.constant 0 : index
      %c0_9 = arith.constant 0 : index
      %20 = vector.load %arg2[%c0, %c0_9] : memref<16x128xf32, #tpu.memory_space<vmem>>, vector<16x128xf32>
      %cst = arith.constant 0.000000e+00 : f32
      %21 = vector.broadcast %cst : f32 to vector<16x128xf32>
      %22 = arith.select %19, %20, %21 : vector<16x128xi1>, vector<16x128xf32>
      %c0_10 = arith.constant 0 : index
      %c0_11 = arith.constant 0 : index
      %23 = vector.load %arg3[%c0_10, %c0_11] : memref<16x128xf32, #tpu.memory_space<vmem>>, vector<16x128xf32>
      %cst_12 = arith.constant 0.000000e+00 : f32
      %24 = vector.broadcast %cst_12 : f32 to vector<16x128xf32>
      %25 = arith.select %19, %23, %24 : vector<16x128xi1>, vector<16x128xf32>
      %cst_13 = arith.constant 0.000000e+00 : f32
      %26 = vector.broadcast %cst_13 : f32 to vector<16x128xf32>
      %27 = arith.maximumf %22, %26 : vector<16x128xf32>
      %28 = arith.mulf %22, %25 : vector<16x128xf32>
      %29 = arith.subf %27, %28 : vector<16x128xf32>
      %30 = math.absf %22 : vector<16x128xf32>
      %cst_14 = arith.constant 0.000000e+00 : f32
      %31 = vector.broadcast %cst_14 : f32 to vector<16x128xf32>
      %32 = arith.subf %31, %30 : vector<16x128xf32>
      %33 = math.exp %32 : vector<16x128xf32>
      %34 = math.log1p %33 : vector<16x128xf32>
      %35 = arith.addf %29, %34 : vector<16x128xf32>
      %cst_15 = arith.constant 0.000000e+00 : f32
      %36 = vector.broadcast %cst_15 : f32 to vector<16x128xf32>
      %37 = arith.select %19, %35, %36 : vector<16x128xi1>, vector<16x128xf32>
      %c0_16 = arith.constant 0 : index
      %c0_17 = arith.constant 0 : index
      %38 = vector.load %arg5[%c0_16, %c0_17] : memref<16x128xf32, #tpu.memory_space<vmem>>, vector<16x128xf32>
      %39 = arith.addf %38, %37 : vector<16x128xf32>
      %c0_18 = arith.constant 0 : index
      %c0_19 = arith.constant 0 : index
      %40 = vector.load %arg5[%c0_18, %c0_19] : memref<16x128xf32, #tpu.memory_space<vmem>>, vector<16x128xf32>
      tpu.vector_store %arg5[%c0_18, %c0_19], %39 {strides = array<i32>} : memref<16x128xf32, #tpu.memory_space<vmem>>, vector<16x128xf32>,
    } else {
    }
    %c0_i32_5 = arith.constant 0 : i32
    %11 = arith.cmpi eq, %arg1, %c0_i32_5 : i32
    %12 = arith.extui %11 : i1 to i32
    %c0_i32_6 = arith.constant 0 : i32
    %13 = arith.cmpi ne, %12, %c0_i32_6 : i32
    scf.if %13 {
      %c0 = arith.constant 0 : index
      %c0_7 = arith.constant 0 : index
      %14 = vector.load %arg5[%c0, %c0_7] : memref<16x128xf32, #tpu.memory_space<vmem>>, vector<16x128xf32>
      %15 = vector.shape_cast %14 : vector<16x128xf32> to vector<1x16x128xf32>
      %cst = arith.constant dense<0.000000e+00> : vector<1xf32>
      %16 = vector.multi_reduction <add>, %15, %cst [1, 2] : vector<1x16x128xf32> to vector<1xf32>
      %17 = vector.shape_cast %16 : vector<1xf32> to vector<1x1x1xf32>
      %18 = vector.extract %17[0, 0, 0] : f32 from vector<1x1x1xf32>
      %c0_8 = arith.constant 0 : index
      %c0_9 = arith.constant 0 : index
      %19 = memref.load %arg4[%c0_8, %c0_9] : memref<1x1xf32, #tpu.memory_space<smem>>
      memref.store %18, %arg4[%c0_8, %c0_9] : memref<1x1xf32, #tpu.memory_space<smem>>
    } else {
    }
    return
  }
  func.func @transform_0(%arg0: i32, %arg1: i32) -> (i32, i32) {
    %c1_i32 = arith.constant 1 : i32
    %0 = arith.muli %arg0, %c1_i32 : i32
    %1 = arith.addi %0, %arg1 : i32
    %c0_i32 = arith.constant 0 : i32
    %2 = arith.minsi %1, %c0_i32 : i32
    %c0_i32_0 = arith.constant 0 : i32
    %c0_i32_1 = arith.constant 0 : i32
    return %2, %c0_i32_0 : i32, i32
  }
  func.func @transform_1(%arg0: i32, %arg1: i32) -> (i32, i32) {
    %c1_i32 = arith.constant 1 : i32
    %0 = arith.muli %arg0, %c1_i32 : i32
    %1 = arith.addi %0, %arg1 : i32
    %c0_i32 = arith.constant 0 : i32
    %2 = arith.minsi %1, %c0_i32 : i32
    %c0_i32_0 = arith.constant 0 : i32
    %c0_i32_1 = arith.constant 0 : i32
    return %2, %c0_i32_0 : i32, i32
  }
  func.func @transform_2(%arg0: i32, %arg1: i32) -> (i32, i32) {
    %c0_i32 = arith.constant 0 : i32
    %c0_i32_0 = arith.constant 0 : i32
    return %arg0, %c0_i32 : i32, i32
  }
}

</mosaic_0001>

<bundles_post_ra>
// kernel: tpu_custom_call.1
= control target key start
LH: loop header
LB: loop body
LE: loop exit
PB: predicated region body
PF: predicated region fallthrough
CT: control target
= control target key end

     0   :  { %7 = vsyncpa [#allocation4], 0  ;;  %s346_s0 = inlined_call_operand.hbm [shape: f32[16,128], index: 0, kind: input, shape index: {}]   ;;  %s347_s1 = inlined_call_operand.hbm [shape: f32[16,128], index: 1, kind: input, shape index: {}]   ;;  %s348_s2 = inlined_call_operand.hbm [shape: f32[1,1], index: 2, kind: output, shape index: {}]  }
   0x1   :  { %8 = vsyncpa [#allocation7], 0 }
   0x2   :  { %9 = vsyncpa [#allocation5], 0  ;;  %s290_s9 = smov [#allocation3]   ;;  %s230_s13 = scalar_lea.hbm %s346_s0, 256 }
   0x3   :  { %s21_s10 = sshll.u32 %s290_s9, 4  ;;  %p231_p0 = scmp.ne.s32.totalorder %s346_s0, %s230_s13  ;;  %s22_s10 = int_to_ptr.vmem [resolvable:$true] %s21_s10 }
   0x4   :  { %p234_p1 = scmp.lt.u32.totalorder %s230_s13, %s346_s0 }
   0x6   :  { %p236_p2 = pnand %p234_p1, %p231_p0 }
   0x8   :  { %239 = shalt.err (!%p236_p2)
}
   0x9   :  { %s240_s18 = scalar_lea.vmem %s22_s10, 256  ;;  %p245_p4 = scmp.lt.s32.totalorder %s22_s10, %s22_s10 }
   0xa   :  { %p241_p3 = scmp.ne.s32.totalorder %s22_s10, %s240_s18  ;;  %p246_p5 = scmp.lt.s32.totalorder %s240_s18, %s240_s18 }
   0xc   :  { %p247_p6 = por %p246_p5, %p245_p4 }
   0xe   :  { %p248_p7 = pnand %p247_p6, %p241_p3 }
  0x10   :  { %251 = shalt.err (!%p248_p7)
}
  0x11   :  { %s291_s19 = smov 128   ;;  %s292_s20 = smov 8  }
  0x12   :  { %27 = dma.hbm_to_vmem [thread:$0]  %s346_s0, 256, %s22_s10, [#allocation4], %s291_s19, %s291_s19, %s292_s20  }
  0x13   :  { %s293_s23 = smov [#allocation6]   ;;  %s252_s27 = scalar_lea.hbm %s347_s1, 256 }
  0x14   :  { %s39_s24 = sshll.u32 %s293_s23, 4  ;;  %p253_p8 = scmp.ne.s32.totalorder %s347_s1, %s252_s27  ;;  %s40_s24 = int_to_ptr.vmem [resolvable:$true] %s39_s24 }
  0x15   :  { %p256_p9 = scmp.lt.u32.totalorder %s252_s27, %s347_s1 }
  0x17   :  { %p258_p10 = pnand %p256_p9, %p253_p8 }
  0x19   :  { %261 = shalt.err (!%p258_p10)
}
  0x1a   :  { %s262_s4 = scalar_lea.vmem %s40_s24, 256  ;;  %p267_p12 = scmp.lt.s32.totalorder %s40_s24, %s40_s24 }
  0x1b   :  { %p263_p11 = scmp.ne.s32.totalorder %s40_s24, %s262_s4  ;;  %p268_p13 = scmp.lt.s32.totalorder %s262_s4, %s262_s4 }
  0x1d   :  { %p269_p0 = por %p268_p13, %p267_p12 }
  0x1f   :  { %p270_p1 = pnand %p269_p0, %p263_p11 }
  0x21   :  { %273 = shalt.err (!%p270_p1)
}
  0x22   :  { %45 = dma.hbm_to_vmem [thread:$0]  %s347_s1, 256, %s40_s24, [#allocation7], %s291_s19, %s291_s19, %s292_s20  }
  0x23   :  { %284 = dma.done.wait [#allocation4], 256  }
  0x24   :  { %285 = vsyncadd [#allocation4], 4294967040 }
  0x25   :  { %286 = dma.done.wait [#allocation7], 256  }
  0x26   :  { %287 = vsyncadd [#allocation7], 4294967040  ;;  %v71_v0 = vld [vmem:[#allocation3] sm:$0xff]  ;;  %v72_v1 = vld [vmem:[#allocation3 + $0x8] sm:$0xff]  ;;  %s274_s8 = scalar_lea.hbm %s348_s2, 16 }
  0x27   :  { %v81_v2 = vand.u32 2147483647, %v71_v0  ;;  %v82_v3 = vand.u32 2147483647, %v72_v1  ;;  %v73_v14 = vld [vmem:[#allocation6] sm:$0xff]  ;;  %v74_v15 = vld [vmem:[#allocation6 + $0x8] sm:$0xff]  ;;  %p275_p2 = scmp.ne.s32.totalorder %s348_s2, %s274_s8  ;;  %p278_p3 = scmp.lt.u32.totalorder %s274_s8, %s348_s2 }
  0x28   :  { %v75_v17 = vmax.f32 %v71_v0, 0.0  ;;  %v77_v18 = vmul.f32 %v73_v14, %v71_v0  ;;  %v76_v21 = vmax.f32 %v72_v1, 0.0  ;;  %v78_v22 = vmul.f32 %v74_v15, %v72_v1 }
  0x29   :  { %v83_v4 = vsub.f32 0.0, %v81_v2  ;;  %v84_v5 = vsub.f32 0.0, %v82_v3  ;;  %p280_p4 = pnand %p278_p3, %p275_p2 }
  0x2a   :  { %v79_v26 = vsub.f32 %v75_v17, %v77_v18  ;;  %v80_v29 = vsub.f32 %v76_v21, %v78_v22 }
  0x2b   :  { %v85_v6 = vmul.f32 1.442695, %v83_v4  ;;  %v87_v7 = vmul.f32 1.442695, %v84_v5 }
  0x2d   :  { %222 = vpow2.f32 %v85_v6 }
  0x2e   :  { %224 = vpow2.f32 %v87_v7 }
  0x37   :  { %v223_v8 = vpop.eup %222 }
  0x38   :  { %v225_v9 = vpop.eup %224  ;;  %v89_v10 = vadd.f32 1.0, %v223_v8  ;;  %v92_v12 = vmul.f32 -0.5, %v223_v8  ;;  %v95_v19 = vand.u32 2147483647, %v223_v8 }
  0x39   :  { %v98_v11 = vadd.f32 1.0, %v225_v9  ;;  %v101_v13 = vmul.f32 -0.5, %v225_v9  ;;  %v104_v23 = vand.u32 2147483647, %v225_v9 }
  0x3a   :  { %226 = vlog2.f32 %v89_v10  ;;  %v93_v16 = vadd.f32 1.0, %v92_v12  ;;  %vm96_vm0 = vcmp.lt.f32.partialorder %v95_v19, 0.0004427343 }
  0x3b   :  { %228 = vlog2.f32 %v98_v11  ;;  %v102_v20 = vadd.f32 1.0, %v101_v13  ;;  %vm105_vm1 = vcmp.lt.f32.partialorder %v104_v23, 0.0004427343 }
  0x3c   :  { %v94_v24 = vmul.f32 %v223_v8, %v93_v16 }
  0x3d   :  { %v103_v27 = vmul.f32 %v225_v9, %v102_v20 }
  0x44   :  { %v227_v25 = vpop.eup %226 }
  0x45   :  { %v229_v28 = vpop.eup %228  ;;  %v91_v30 = vmul.f32 0.6931472, %v227_v25 }
  0x46   :  { %v100_v31 = vmul.f32 0.6931472, %v229_v28 }
  0x47   :  { %v97_v32 = vsel %vm96_vm0, %v94_v24, %v91_v30 }
  0x48   :  { %v106_v33 = vsel %vm105_vm1, %v103_v27, %v100_v31  ;;  %v107_v34 = vadd.f32 %v97_v32, %v79_v26 }
  0x49   :  { %v108_v35 = vadd.f32 %v106_v33, %v80_v29 }
  0x4b   :  { %v184_v36 = vadd.f32 %v108_v35, %v107_v34 }
  0x4d   :  { %185 = vadd.xlane.f32.xlu0 %v184_v36 }
  0xda   :  { %v186_v37 = vpop.xlane.xlu0 %185 }
  0xdb   :  { %v187_v38 = vrot.slane %v186_v37, 4 }
  0xdd   :  { %v188_v39 = vadd.f32 %v187_v38, %v186_v37 }
  0xdf   :  { %v189_v40 = vrot.slane %v188_v39, 2 }
  0xe1   :  { %v190_v41 = vadd.f32 %v189_v40, %v188_v39 }
  0xe3   :  { %v191_v42 = vrot.slane %v190_v41, 1 }
  0xe5   :  { %v192_v43 = vadd.f32 %v191_v42, %v190_v41 }
  0xe7   :  { %215 = vpush %v192_v43 }
 0x118   :  { %s216_s1 = spop %215 }
 0x119   :  { %195 = sst [smem:[#allocation8]] %s216_s1 }
 0x11a   :  { %283 = shalt.err (!%p280_p4)
}
 0x11b   :  { %s294_s13 = smov [#allocation8]  }
 0x11c   :  { %203 = dma.smem_to_hbm %s294_s13, 16, %s348_s2, [#allocation5]  }
 0x11d   :  { %288 = dma.done.wait [#allocation5], 16  }
 0x11e   :  { %289 = vsyncadd [#allocation5], 4294967280 }
 0x11f   :  { %207 = sfence }
 0x120   :  { %208 = vsyncpa [#allocation4], 1 }
 0x121   :  { %209 = vsyncpa [#allocation7], 1 }
 0x122   :  { %210 = vsyncpa [#allocation5], 1 }

</bundles_post_ra>
